<compile_context>
chip_gen: v7x
topology: tpu7x:2x2x1
jax: 0.10.0
libtpu: 0.0.40
codegen_flags: <defaults>
</compile_context>

<pallas_src>
import jax
import jax.numpy as jnp
from jax.experimental import pallas as pl
from jax.experimental.pallas import tpu as pltpu

# ----- toy "config" (small, deterministic, shapes consistent with HyenaCascade.__init__) -----
BATCH = 2
L_SEQ = 16                       # sequence length
HIDDEN = 32                      # config.hidden_size
NUM_HEADS = 4                    # config.num_attention_heads
HEAD_DIM = HIDDEN // NUM_HEADS   # hidden_size_per_attention_head = 8
STATE_SIZE = 8                   # config.state_size
SHORT_K = 3                      # config.short_filter_length
NUM_SYSTEMS = HIDDEN             # hyena_filter_groups == hidden_size (channels_per_group = 1)
CHUNK_LEN = 8                    # time chunk per grid step (use 128 at production L)
LANE = 128                       # dense lane tile width (channel padding target)


def hyena_cascade_kernel(u_ref, wr_ref, b_ref, h_ref, wh_ref, wi_ref, dec_ref, d_ref,
                         o_ref, prevu_ref, state_ref):
    """One (batch-element, time-chunk) grid step.

    u_ref:     (1, 3, T, C) input chunk, streams [x2 | x1 | v] on axis 1, channels on lanes.
    wr_ref:    (3, K, C)    tap-reversed depthwise short-FIR weights.
    b_ref:     (3, 1, C)    short-FIR bias.
    h_ref:     (T, C)       first T taps of the modal filter (intra-chunk conv).
    wh_ref:    (S, T, C)    history weights  r[c,s] * exp(p[c,s] * (t+1)).
    wi_ref:    (S, T, C)    state-input weights exp(p[c,s] * (T-1-t)).
    dec_ref:   (S, C)       per-chunk state decay exp(p[c,s] * T).
    d_ref:     (1, C)       skip D.
    o_ref:     (1, T, C)    output chunk (lane-dense, final (B, L, C) layout).
    prevu_ref: (3, T, C)    scratch: previous chunk of u (short-FIR halo across chunks).
    state_ref: (S, C)       scratch: modal state carried across chunks.
    """
    m = pl.program_id(1)

    @pl.when(m == 0)
    def _init():                                     # causal start of a new sequence
        prevu_ref[...] = jnp.zeros_like(prevu_ref)
        state_ref[...] = jnp.zeros_like(state_ref)

    T = o_ref.shape[1]
    K = wr_ref.shape[1]
    S = wh_ref.shape[0]

    t_col = jax.lax.broadcasted_iota(jnp.int32, (T, 1), 0)   # local time index on sublanes

    u = u_ref[0]                                     # (3, T, C)
    prev = prevu_ref[...]                            # (3, T, C) previous chunk (zeros at m==0)

    # ---- 1) depthwise causal short FIR + bias (K taps; halo via roll + select, no concat) ----
    def causal_fir(x, px, w, bias):
        # x, px: (T, C); w: (K, C); bias: (1, C)
        z = bias + w[0:1, :] * x                     # bias folded into the tap-0 FMA
        for d in range(1, K):
            cur = pltpu.roll(x, shift=d, axis=0)     # x[t-d]            for t >= d
            prv = pltpu.roll(px, shift=d, axis=0)    # prev[T + t - d]   for t <  d
            z = z + w[d:d + 1, :] * jnp.where(t_col >= d, cur, prv)
        return z

    x2 = causal_fir(u[0], prev[0], wr_ref[0], b_ref[0])
    x1 = causal_fir(u[1], prev[1], wr_ref[1], b_ref[1])
    v = causal_fir(u[2], prev[2], wr_ref[2], b_ref[2])
    prevu_ref[...] = u                               # halo for the next chunk

    # ---- 2) gate pre-product ----
    x1v = x1 * v                                     # (T, C)

    # ---- 3) chunked modal long conv ----
    h = h_ref[...]                                   # (T, C)
    s_prev = state_ref[...]                          # (S, C)
    wh = wh_ref[...]                                 # (S, T, C)
    wi = wi_ref[...]                                 # (S, T, C)
    dec = dec_ref[...]                               # (S, C)

    # intra-chunk causal conv (tap form: rolls on the XLU, FMAs on the VPU)
    # TODO(synk): for production T (=128) switch this unrolled Python loop to lax.fori_loop.
    y = h[0:1, :] * x1v
    for d in range(1, T):
        shifted = jnp.where(t_col >= d, pltpu.roll(x1v, shift=d, axis=0), 0.0)
        y = y + h[d:d + 1, :] * shifted

    # exact cross-chunk history from the modal state + per-mode state update
    new_state = []
    for s in range(S):
        y = y + wh[s] * s_prev[s:s + 1, :]
        new_state.append(dec[s:s + 1, :] * s_prev[s:s + 1, :]
                         + jnp.sum(wi[s] * x1v, axis=0, keepdims=True))
    state_ref[...] = jnp.concatenate(new_state, axis=0)

    # ---- 4) skip (D) + output gate; lane-dense store in the final (B, L, C) layout ----
    o_ref[0] = ((y + x1v * d_ref[...]) * x2).astype(o_ref.dtype)


def _column_split_reorder(x, heads, head_dim):
    """Reorder the last (3*hidden) channel axis from per-head interleaved [x2|x1|v] blocks
    into a separate stream axis: (..., 3*hidden) -> (..., 3, hidden), streams = (x2, x1, v)."""
    lead = x.shape[:-1]
    x = x.reshape(*lead, heads, 3, head_dim)
    x = jnp.swapaxes(x, -3, -2)
    return x.reshape(*lead, 3, heads * head_dim)


def hyena_cascade_forward(u, params, *, chunk=CHUNK_LEN):
    """u: (B, L, 3*hidden) -> y: (B, L, hidden), identical to HyenaCascade.parallel_forward."""
    B, L, _ = u.shape
    H, S, K = HIDDEN, STATE_SIZE, SHORT_K
    assert L % chunk == 0
    n_chunks = L // chunk
    HP = ((H + LANE - 1) // LANE) * LANE             # lane-dense channel padding (128-wide tile)
    pad = HP - H

    # --- glue: column-split channel reorder, lane padding, stream axis out front ---
    u_cs = _column_split_reorder(u.astype(jnp.float32), NUM_HEADS, HEAD_DIM)       # (B, L, 3, H)
    u_cs = jnp.pad(u_cs, ((0, 0), (0, 0), (0, 0), (0, pad)))
    u_cs = jnp.transpose(u_cs, (0, 2, 1, 3))                                       # (B, 3, L, HP)

    w = params["short_filter_weight"][:, 0, :]                                     # (3H, K)
    w_cs = _column_split_reorder(jnp.transpose(w), NUM_HEADS, HEAD_DIM)            # (K, 3, H)
    w_cs = jnp.pad(w_cs, ((0, 0), (0, 0), (0, pad)))
    wr = jnp.transpose(w_cs[::-1], (1, 0, 2))                                      # (3, K, HP) tap-rev
    b_cs = _column_split_reorder(params["short_filter_bias"], NUM_HEADS, HEAD_DIM) # (3, H)
    b_cs = jnp.pad(b_cs, ((0, 0), (0, pad)))[:, None, :]                           # (3, 1, HP)

    # --- modal-filter precompute (batch & chunk invariant; all exp() hoisted out of the kernel) ---
    p = params["log_poles"][:, :, 0].astype(jnp.float32)                           # (H, S)
    r = params["residues"].astype(jnp.float32)                                     # (H, S)
    t = jnp.arange(chunk, dtype=jnp.float32)
    h_tap = jnp.sum(r[None] * jnp.exp(p[None] * t[:, None, None]), axis=2)         # (chunk, H)
    w_hist = jnp.transpose(r)[:, None, :] * jnp.exp(
        jnp.transpose(p)[:, None, :] * (t[None, :, None] + 1.0))                   # (S, chunk, H)
    w_in = jnp.exp(jnp.transpose(p)[:, None, :] * (chunk - 1.0 - t)[None, :, None])  # (S, chunk, H)
    decay = jnp.exp(jnp.transpose(p) * float(chunk))                               # (S, H)

    h_tap = jnp.pad(h_tap, ((0, 0), (0, pad)))
    w_hist = jnp.pad(w_hist, ((0, 0), (0, 0), (0, pad)))
    w_in = jnp.pad(w_in, ((0, 0), (0, 0), (0, pad)))
    decay = jnp.pad(decay, ((0, 0), (0, pad)))
    Dp = jnp.pad(params["D"].astype(jnp.float32), (0, pad))[None, :]               # (1, HP)

    flops_per_chunk = (3 * (2 * K + 1) * chunk * HP      # short FIR
                       + chunk * HP                       # x1 * v
                       + 2 * chunk * chunk * HP           # intra-chunk taps
                       + 2 * S * chunk * HP               # cross-chunk history
                       + (2 * S * chunk + 2 * S) * HP     # state update
                       + 3 * chunk * HP)                  # skip + gate
    bytes_accessed = 4 * (u_cs.size + B * L * HP + wr.size + b_cs.size + h_tap.size
                          + w_hist.size + w_in.size + decay.size + Dp.size)

    out = pl.pallas_call(
        hyena_cascade_kernel,
        out_shape=jax.ShapeDtypeStruct((B, L, HP), jnp.float32),
        grid=(B, n_chunks),
        in_specs=[
            pl.BlockSpec((1, 3, chunk, HP), lambda b, m: (b, 0, m, 0)),   # u chunk
            pl.BlockSpec((3, K, HP), lambda b, m: (0, 0, 0)),             # short-FIR weights
            pl.BlockSpec((3, 1, HP), lambda b, m: (0, 0, 0)),             # short-FIR bias
            pl.BlockSpec((chunk, HP), lambda b, m: (0, 0)),               # h taps (intra chunk)
            pl.BlockSpec((S, chunk, HP), lambda b, m: (0, 0, 0)),         # history weights
            pl.BlockSpec((S, chunk, HP), lambda b, m: (0, 0, 0)),         # state-input weights
            pl.BlockSpec((S, HP), lambda b, m: (0, 0)),                   # per-chunk decay
            pl.BlockSpec((1, HP), lambda b, m: (0, 0)),                   # D skip
        ],
        out_specs=pl.BlockSpec((1, chunk, HP), lambda b, m: (b, m, 0)),
        scratch_shapes=[
            pltpu.VMEM((3, chunk, HP), jnp.float32),   # previous-chunk u (short-FIR halo)
            pltpu.VMEM((S, HP), jnp.float32),          # modal state carried across chunks
        ],
        compiler_params=pltpu.CompilerParams(
            # batch across TensorCores (v7x megacore); chunk axis carries state -> sequential
            dimension_semantics=("parallel", "arbitrary"),
        ),
        cost_estimate=pl.CostEstimate(
            flops=int(B * n_chunks * flops_per_chunk),
            transcendentals=0,
            bytes_accessed=int(bytes_accessed),
        ),
    )(u_cs, wr, b_cs, h_tap, w_hist, w_in, decay, Dp)

    return out[:, :, :H]


def reference_forward(u, params):
    """Pure-JAX mirror of the torch module (original channel order, column split via reshape)."""
    B_, L_, _ = u.shape
    w = params["short_filter_weight"]           # (3H, 1, K)
    b = params["short_filter_bias"]
    K = w.shape[-1]
    ut = jnp.transpose(u, (0, 2, 1))            # (B, 3H, L)
    upad = jnp.pad(ut, ((0, 0), (0, 0), (K - 1, 0)))
    z = sum(w[:, 0, k][None, :, None] * upad[:, :, k:k + L_] for k in range(K))
    z = z + b[None, :, None]

    z3 = z.reshape(B_, NUM_HEADS, 3 * HEAD_DIM, L_)
    x2 = z3[:, :, :HEAD_DIM].reshape(B_, HIDDEN, L_)
    x1 = z3[:, :, HEAD_DIM:2 * HEAD_DIM].reshape(B_, HIDDEN, L_)
    v = z3[:, :, 2 * HEAD_DIM:].reshape(B_, HIDDEN, L_)
    x1v = x1 * v

    t = jnp.arange(L_, dtype=jnp.float32)
    h = jnp.sum(params["residues"][:, :, None]
                * jnp.exp(params["log_poles"] * t[None, None, :]), axis=1)         # (H, L)

    # causal linear conv == rfft(n=2L)/irfft(norm="forward") path truncated to L
    d = jnp.arange(L_)[None, :] - jnp.arange(L_)[:, None]                          # d[s, t] = t - s
    hTm = jnp.where(d[None] >= 0, h[:, jnp.clip(d, 0, L_ - 1)], 0.0)               # (H, L, L)
    y = jnp.einsum("bcs,cst->bct", x1v, hTm)

    y = (y + x1v * params["D"][None, :, None]) * x2
    return jnp.transpose(y, (0, 2, 1))


if __name__ == "__main__":
    key = jax.random.PRNGKey(0)
    ks = jax.random.split(key, 5)
    params = {
        # shapes exactly as in HyenaCascade.__init__
        "short_filter_weight": jax.random.normal(ks[0], (3 * HIDDEN, 1, SHORT_K), jnp.float32),
        "short_filter_bias": jax.random.normal(ks[1], (3 * HIDDEN,), jnp.float32),
        # module uses randn; negate so exp(log_poles * t) stays bounded (stable decaying modes)
        "log_poles": -jnp.abs(jax.random.normal(ks[2], (NUM_SYSTEMS, STATE_SIZE, 1), jnp.float32)),
        "residues": jax.random.normal(ks[3], (NUM_SYSTEMS, STATE_SIZE), jnp.float32),
        "D": jnp.zeros((HIDDEN,), jnp.float32),   # module initializes D to zeros
    }
    u = jax.random.normal(ks[4], (BATCH, L_SEQ, 3 * HIDDEN), jnp.float32)

    fwd = jax.jit(hyena_cascade_forward)
    y = jax.block_until_ready(fwd(u, params))
    assert y.shape == (BATCH, L_SEQ, HIDDEN)

    y_ref = reference_forward(u, params)
    if not bool(jnp.allclose(y, y_ref, rtol=1e-3, atol=1e-3)):
        raise AssertionError(
            f"kernel/reference mismatch, max abs err = {float(jnp.max(jnp.abs(y - y_ref)))}"
        )
    print("KERNEL_OK")
</pallas_src>

<mosaic_0001>
module attributes {stable_mosaic.version = 11 : i64} {
  func.func @hyena_cascade_kernel(%arg0: i32, %arg1: i32, %arg2: memref<1x3x8x128xf32, #tpu.memory_space<vmem>>, %arg3: memref<3x3x128xf32, #tpu.memory_space<vmem>>, %arg4: memref<3x1x128xf32, #tpu.memory_space<vmem>>, %arg5: memref<8x128xf32, #tpu.memory_space<vmem>>, %arg6: memref<8x8x128xf32, #tpu.memory_space<vmem>>, %arg7: memref<8x8x128xf32, #tpu.memory_space<vmem>>, %arg8: memref<8x128xf32, #tpu.memory_space<vmem>>, %arg9: memref<1x128xf32, #tpu.memory_space<vmem>>, %arg10: memref<1x8x128xf32, #tpu.memory_space<vmem>>, %arg11: memref<3x8x128xf32, #tpu.memory_space<vmem>>, %arg12: memref<8x128xf32, #tpu.memory_space<vmem>>) attributes {dimension_semantics = [#tpu.dimension_semantics<parallel>, #tpu.dimension_semantics<arbitrary>], iteration_bounds = array<i64: 2, 2>, scalar_prefetch = 0 : i64, scratch_operands = 2 : i64, tpu.core_type = #tpu.core_type<tc>, window_params = [{transform_indices = @transform_0, window_bounds = array<i64: 1, 3, 8, 128>}, {pipeline_mode = #tpu.pipeline_mode<synchronous>, transform_indices = @transform_1, window_bounds = array<i64: 3, 3, 128>}, {pipeline_mode = #tpu.pipeline_mode<synchronous>, transform_indices = @transform_2, window_bounds = array<i64: 3, 1, 128>}, {pipeline_mode = #tpu.pipeline_mode<synchronous>, transform_indices = @transform_3, window_bounds = array<i64: 8, 128>}, {pipeline_mode = #tpu.pipeline_mode<synchronous>, transform_indices = @transform_4, window_bounds = array<i64: 8, 8, 128>}, {pipeline_mode = #tpu.pipeline_mode<synchronous>, transform_indices = @transform_5, window_bounds = array<i64: 8, 8, 128>}, {pipeline_mode = #tpu.pipeline_mode<synchronous>, transform_indices = @transform_6, window_bounds = array<i64: 8, 128>}, {pipeline_mode = #tpu.pipeline_mode<synchronous>, transform_indices = @transform_7, window_bounds = array<i64: 1, 128>}, {transform_indices = @transform_8, window_bounds = array<i64: 1, 8, 128>}]} {
    %c0_i32 = arith.constant 0 : i32
    %0 = arith.cmpi eq, %arg1, %c0_i32 : i32
    %1 = arith.extui %0 : i1 to i32
    %c0_i32_0 = arith.constant 0 : i32
    %2 = arith.cmpi ne, %1, %c0_i32_0 : i32
    scf.if %2 {
      %cst_84 = arith.constant 0.000000e+00 : f32
      %329 = vector.broadcast %cst_84 : f32 to vector<3x8x128xf32>
      %c0_85 = arith.constant 0 : index
      %c0_86 = arith.constant 0 : index
      %c0_87 = arith.constant 0 : index
      %330 = vector.load %arg11[%c0_85, %c0_86, %c0_87] : memref<3x8x128xf32, #tpu.memory_space<vmem>>, vector<3x8x128xf32>
      tpu.vector_store %arg11[%c0_85, %c0_86, %c0_87], %329 {strides = array<i32>} : memref<3x8x128xf32, #tpu.memory_space<vmem>>, vector<3x8x128xf32>,
      %cst_88 = arith.constant 0.000000e+00 : f32
      %331 = vector.broadcast %cst_88 : f32 to vector<8x128xf32>
      %c0_89 = arith.constant 0 : index
      %c0_90 = arith.constant 0 : index
      %332 = vector.load %arg12[%c0_89, %c0_90] : memref<8x128xf32, #tpu.memory_space<vmem>>, vector<8x128xf32>
      tpu.vector_store %arg12[%c0_89, %c0_90], %331 {strides = array<i32>} : memref<8x128xf32, #tpu.memory_space<vmem>>, vector<8x128xf32>,
    } else {
    }
    %3 = tpu.iota {dimensions = array<i32: 0>} : vector<8x1xi32>
    %c0 = arith.constant 0 : index
    %c0_1 = arith.constant 0 : index
    %c0_2 = arith.constant 0 : index
    %c0_3 = arith.constant 0 : index
    %4 = vector.load %arg2[%c0, %c0_1, %c0_2, %c0_3] : memref<1x3x8x128xf32, #tpu.memory_space<vmem>>, vector<1x3x8x128xf32>
    %5 = vector.shape_cast %4 : vector<1x3x8x128xf32> to vector<3x8x128xf32>
    %c0_4 = arith.constant 0 : index
    %c0_5 = arith.constant 0 : index
    %c0_6 = arith.constant 0 : index
    %6 = vector.load %arg11[%c0_4, %c0_5, %c0_6] : memref<3x8x128xf32, #tpu.memory_space<vmem>>, vector<3x8x128xf32>
    %7 = vector.extract_strided_slice %5 {offsets = [0, 0, 0], sizes = [1, 8, 128], strides = [1, 1, 1]} : vector<3x8x128xf32> to vector<1x8x128xf32>
    %8 = vector.shape_cast %7 : vector<1x8x128xf32> to vector<8x128xf32>
    %9 = vector.extract_strided_slice %6 {offsets = [0, 0, 0], sizes = [1, 8, 128], strides = [1, 1, 1]} : vector<3x8x128xf32> to vector<1x8x128xf32>
    %10 = vector.shape_cast %9 : vector<1x8x128xf32> to vector<8x128xf32>
    %c0_7 = arith.constant 0 : index
    %c0_8 = arith.constant 0 : index
    %c0_9 = arith.constant 0 : index
    %11 = vector.load %arg3[%c0_7, %c0_8, %c0_9] : memref<3x3x128xf32, #tpu.memory_space<vmem>>, vector<1x3x128xf32>
    %12 = vector.shape_cast %11 : vector<1x3x128xf32> to vector<3x128xf32>
    %c0_10 = arith.constant 0 : index
    %c0_11 = arith.constant 0 : index
    %c0_12 = arith.constant 0 : index
    %13 = vector.load %arg4[%c0_10, %c0_11, %c0_12] : memref<3x1x128xf32, #tpu.memory_space<vmem>>, vector<1x1x128xf32>
    %14 = vector.shape_cast %13 : vector<1x1x128xf32> to vector<1x128xf32>
    %15 = vector.extract_strided_slice %12 {offsets = [0, 0], sizes = [1, 128], strides = [1, 1]} : vector<3x128xf32> to vector<1x128xf32>
    %16 = vector.broadcast %15 : vector<1x128xf32> to vector<8x128xf32>
    %17 = arith.mulf %16, %8 : vector<8x128xf32>
    %18 = vector.broadcast %14 : vector<1x128xf32> to vector<8x128xf32>
    %19 = arith.addf %18, %17 : vector<8x128xf32>
    %c1_i32 = arith.constant 1 : i32
    %20 = tpu.dynamic_rotate %8 by %c1_i32 dim 0 : vector<8x128xf32>, i32 -> vector<8x128xf32>
    %c1_i32_13 = arith.constant 1 : i32
    %21 = tpu.dynamic_rotate %10 by %c1_i32_13 dim 0 : vector<8x128xf32>, i32 -> vector<8x128xf32>
    %22 = vector.extract_strided_slice %12 {offsets = [1, 0], sizes = [1, 128], strides = [1, 1]} : vector<3x128xf32> to vector<1x128xf32>
    %c1_i32_14 = arith.constant 1 : i32
    %23 = vector.broadcast %c1_i32_14 : i32 to vector<8x1xi32>
    %24 = arith.cmpi sge, %3, %23 : vector<8x1xi32>
    %25 = vector.shape_cast %24 : vector<8x1xi1> to vector<8x1xi1>
    %26 = vector.broadcast %25 : vector<8x1xi1> to vector<8x128xi1>
    %27 = arith.select %26, %20, %21 : vector<8x128xi1>, vector<8x128xf32>
    %28 = vector.broadcast %22 : vector<1x128xf32> to vector<8x128xf32>
    %29 = arith.mulf %28, %27 : vector<8x128xf32>
    %30 = arith.addf %19, %29 : vector<8x128xf32>
    %c2_i32 = arith.constant 2 : i32
    %31 = tpu.dynamic_rotate %8 by %c2_i32 dim 0 : vector<8x128xf32>, i32 -> vector<8x128xf32>
    %c2_i32_15 = arith.constant 2 : i32
    %32 = tpu.dynamic_rotate %10 by %c2_i32_15 dim 0 : vector<8x128xf32>, i32 -> vector<8x128xf32>
    %33 = vector.extract_strided_slice %12 {offsets = [2, 0], sizes = [1, 128], strides = [1, 1]} : vector<3x128xf32> to vector<1x128xf32>
    %c2_i32_16 = arith.constant 2 : i32
    %34 = vector.broadcast %c2_i32_16 : i32 to vector<8x1xi32>
    %35 = arith.cmpi sge, %3, %34 : vector<8x1xi32>
    %36 = vector.shape_cast %35 : vector<8x1xi1> to vector<8x1xi1>
    %37 = vector.broadcast %36 : vector<8x1xi1> to vector<8x128xi1>
    %38 = arith.select %37, %31, %32 : vector<8x128xi1>, vector<8x128xf32>
    %39 = vector.broadcast %33 : vector<1x128xf32> to vector<8x128xf32>
    %40 = arith.mulf %39, %38 : vector<8x128xf32>
    %41 = arith.addf %30, %40 : vector<8x128xf32>
    %42 = vector.extract_strided_slice %5 {offsets = [1, 0, 0], sizes = [1, 8, 128], strides = [1, 1, 1]} : vector<3x8x128xf32> to vector<1x8x128xf32>
    %43 = vector.shape_cast %42 : vector<1x8x128xf32> to vector<8x128xf32>
    %44 = vector.extract_strided_slice %6 {offsets = [1, 0, 0], sizes = [1, 8, 128], strides = [1, 1, 1]} : vector<3x8x128xf32> to vector<1x8x128xf32>
    %45 = vector.shape_cast %44 : vector<1x8x128xf32> to vector<8x128xf32>
    %c1 = arith.constant 1 : index
    %c0_17 = arith.constant 0 : index
    %c0_18 = arith.constant 0 : index
    %46 = vector.load %arg3[%c1, %c0_17, %c0_18] : memref<3x3x128xf32, #tpu.memory_space<vmem>>, vector<1x3x128xf32>
    %47 = vector.shape_cast %46 : vector<1x3x128xf32> to vector<3x128xf32>
    %c1_19 = arith.constant 1 : index
    %c0_20 = arith.constant 0 : index
    %c0_21 = arith.constant 0 : index
    %48 = vector.load %arg4[%c1_19, %c0_20, %c0_21] : memref<3x1x128xf32, #tpu.memory_space<vmem>>, vector<1x1x128xf32>
    %49 = vector.shape_cast %48 : vector<1x1x128xf32> to vector<1x128xf32>
    %50 = vector.extract_strided_slice %47 {offsets = [0, 0], sizes = [1, 128], strides = [1, 1]} : vector<3x128xf32> to vector<1x128xf32>
    %51 = vector.broadcast %50 : vector<1x128xf32> to vector<8x128xf32>
    %52 = arith.mulf %51, %43 : vector<8x128xf32>
    %53 = vector.broadcast %49 : vector<1x128xf32> to vector<8x128xf32>
    %54 = arith.addf %53, %52 : vector<8x128xf32>
    %c1_i32_22 = arith.constant 1 : i32
    %55 = tpu.dynamic_rotate %43 by %c1_i32_22 dim 0 : vector<8x128xf32>, i32 -> vector<8x128xf32>
    %c1_i32_23 = arith.constant 1 : i32
    %56 = tpu.dynamic_rotate %45 by %c1_i32_23 dim 0 : vector<8x128xf32>, i32 -> vector<8x128xf32>
    %57 = vector.extract_strided_slice %47 {offsets = [1, 0], sizes = [1, 128], strides = [1, 1]} : vector<3x128xf32> to vector<1x128xf32>
    %c1_i32_24 = arith.constant 1 : i32
    %58 = vector.broadcast %c1_i32_24 : i32 to vector<8x1xi32>
    %59 = arith.cmpi sge, %3, %58 : vector<8x1xi32>
    %60 = vector.shape_cast %59 : vector<8x1xi1> to vector<8x1xi1>
    %61 = vector.broadcast %60 : vector<8x1xi1> to vector<8x128xi1>
    %62 = arith.select %61, %55, %56 : vector<8x128xi1>, vector<8x128xf32>
    %63 = vector.broadcast %57 : vector<1x128xf32> to vector<8x128xf32>
    %64 = arith.mulf %63, %62 : vector<8x128xf32>
    %65 = arith.addf %54, %64 : vector<8x128xf32>
    %c2_i32_25 = arith.constant 2 : i32
    %66 = tpu.dynamic_rotate %43 by %c2_i32_25 dim 0 : vector<8x128xf32>, i32 -> vector<8x128xf32>
    %c2_i32_26 = arith.constant 2 : i32
    %67 = tpu.dynamic_rotate %45 by %c2_i32_26 dim 0 : vector<8x128xf32>, i32 -> vector<8x128xf32>
    %68 = vector.extract_strided_slice %47 {offsets = [2, 0], sizes = [1, 128], strides = [1, 1]} : vector<3x128xf32> to vector<1x128xf32>
    %c2_i32_27 = arith.constant 2 : i32
    %69 = vector.broadcast %c2_i32_27 : i32 to vector<8x1xi32>
    %70 = arith.cmpi sge, %3, %69 : vector<8x1xi32>
    %71 = vector.shape_cast %70 : vector<8x1xi1> to vector<8x1xi1>
    %72 = vector.broadcast %71 : vector<8x1xi1> to vector<8x128xi1>
    %73 = arith.select %72, %66, %67 : vector<8x128xi1>, vector<8x128xf32>
    %74 = vector.broadcast %68 : vector<1x128xf32> to vector<8x128xf32>
    %75 = arith.mulf %74, %73 : vector<8x128xf32>
    %76 = arith.addf %65, %75 : vector<8x128xf32>
    %77 = vector.extract_strided_slice %5 {offsets = [2, 0, 0], sizes = [1, 8, 128], strides = [1, 1, 1]} : vector<3x8x128xf32> to vector<1x8x128xf32>
    %78 = vector.shape_cast %77 : vector<1x8x128xf32> to vector<8x128xf32>
    %79 = vector.extract_strided_slice %6 {offsets = [2, 0, 0], sizes = [1, 8, 128], strides = [1, 1, 1]} : vector<3x8x128xf32> to vector<1x8x128xf32>
    %80 = vector.shape_cast %79 : vector<1x8x128xf32> to vector<8x128xf32>
    %c2 = arith.constant 2 : index
    %c0_28 = arith.constant 0 : index
    %c0_29 = arith.constant 0 : index
    %81 = vector.load %arg3[%c2, %c0_28, %c0_29] : memref<3x3x128xf32, #tpu.memory_space<vmem>>, vector<1x3x128xf32>
    %82 = vector.shape_cast %81 : vector<1x3x128xf32> to vector<3x128xf32>
    %c2_30 = arith.constant 2 : index
    %c0_31 = arith.constant 0 : index
    %c0_32 = arith.constant 0 : index
    %83 = vector.load %arg4[%c2_30, %c0_31, %c0_32] : memref<3x1x128xf32, #tpu.memory_space<vmem>>, vector<1x1x128xf32>
    %84 = vector.shape_cast %83 : vector<1x1x128xf32> to vector<1x128xf32>
    %85 = vector.extract_strided_slice %82 {offsets = [0, 0], sizes = [1, 128], strides = [1, 1]} : vector<3x128xf32> to vector<1x128xf32>
    %86 = vector.broadcast %85 : vector<1x128xf32> to vector<8x128xf32>
    %87 = arith.mulf %86, %78 : vector<8x128xf32>
    %88 = vector.broadcast %84 : vector<1x128xf32> to vector<8x128xf32>
    %89 = arith.addf %88, %87 : vector<8x128xf32>
    %c1_i32_33 = arith.constant 1 : i32
    %90 = tpu.dynamic_rotate %78 by %c1_i32_33 dim 0 : vector<8x128xf32>, i32 -> vector<8x128xf32>
    %c1_i32_34 = arith.constant 1 : i32
    %91 = tpu.dynamic_rotate %80 by %c1_i32_34 dim 0 : vector<8x128xf32>, i32 -> vector<8x128xf32>
    %92 = vector.extract_strided_slice %82 {offsets = [1, 0], sizes = [1, 128], strides = [1, 1]} : vector<3x128xf32> to vector<1x128xf32>
    %c1_i32_35 = arith.constant 1 : i32
    %93 = vector.broadcast %c1_i32_35 : i32 to vector<8x1xi32>
    %94 = arith.cmpi sge, %3, %93 : vector<8x1xi32>
    %95 = vector.shape_cast %94 : vector<8x1xi1> to vector<8x1xi1>
    %96 = vector.broadcast %95 : vector<8x1xi1> to vector<8x128xi1>
    %97 = arith.select %96, %90, %91 : vector<8x128xi1>, vector<8x128xf32>
    %98 = vector.broadcast %92 : vector<1x128xf32> to vector<8x128xf32>
    %99 = arith.mulf %98, %97 : vector<8x128xf32>
    %100 = arith.addf %89, %99 : vector<8x128xf32>
    %c2_i32_36 = arith.constant 2 : i32
    %101 = tpu.dynamic_rotate %78 by %c2_i32_36 dim 0 : vector<8x128xf32>, i32 -> vector<8x128xf32>
    %c2_i32_37 = arith.constant 2 : i32
    %102 = tpu.dynamic_rotate %80 by %c2_i32_37 dim 0 : vector<8x128xf32>, i32 -> vector<8x128xf32>
    %103 = vector.extract_strided_slice %82 {offsets = [2, 0], sizes = [1, 128], strides = [1, 1]} : vector<3x128xf32> to vector<1x128xf32>
    %c2_i32_38 = arith.constant 2 : i32
    %104 = vector.broadcast %c2_i32_38 : i32 to vector<8x1xi32>
    %105 = arith.cmpi sge, %3, %104 : vector<8x1xi32>
    %106 = vector.shape_cast %105 : vector<8x1xi1> to vector<8x1xi1>
    %107 = vector.broadcast %106 : vector<8x1xi1> to vector<8x128xi1>
    %108 = arith.select %107, %101, %102 : vector<8x128xi1>, vector<8x128xf32>
    %109 = vector.broadcast %103 : vector<1x128xf32> to vector<8x128xf32>
    %110 = arith.mulf %109, %108 : vector<8x128xf32>
    %111 = arith.addf %100, %110 : vector<8x128xf32>
    %c0_39 = arith.constant 0 : index
    %c0_40 = arith.constant 0 : index
    %c0_41 = arith.constant 0 : index
    %112 = vector.load %arg11[%c0_39, %c0_40, %c0_41] : memref<3x8x128xf32, #tpu.memory_space<vmem>>, vector<3x8x128xf32>
    tpu.vector_store %arg11[%c0_39, %c0_40, %c0_41], %5 {strides = array<i32>} : memref<3x8x128xf32, #tpu.memory_space<vmem>>, vector<3x8x128xf32>,
    %113 = arith.mulf %76, %111 : vector<8x128xf32>
    %c0_42 = arith.constant 0 : index
    %c0_43 = arith.constant 0 : index
    %114 = vector.load %arg5[%c0_42, %c0_43] : memref<8x128xf32, #tpu.memory_space<vmem>>, vector<8x128xf32>
    %c0_44 = arith.constant 0 : index
    %c0_45 = arith.constant 0 : index
    %115 = vector.load %arg12[%c0_44, %c0_45] : memref<8x128xf32, #tpu.memory_space<vmem>>, vector<8x128xf32>
    %c0_46 = arith.constant 0 : index
    %c0_47 = arith.constant 0 : index
    %c0_48 = arith.constant 0 : index
    %116 = vector.load %arg6[%c0_46, %c0_47, %c0_48] : memref<8x8x128xf32, #tpu.memory_space<vmem>>, vector<8x8x128xf32>
    %c0_49 = arith.constant 0 : index
    %c0_50 = arith.constant 0 : index
    %c0_51 = arith.constant 0 : index
    %117 = vector.load %arg7[%c0_49, %c0_50, %c0_51] : memref<8x8x128xf32, #tpu.memory_space<vmem>>, vector<8x8x128xf32>
    %c0_52 = arith.constant 0 : index
    %c0_53 = arith.constant 0 : index
    %118 = vector.load %arg8[%c0_52, %c0_53] : memref<8x128xf32, #tpu.memory_space<vmem>>, vector<8x128xf32>
    %119 = vector.extract_strided_slice %114 {offsets = [0, 0], sizes = [1, 128], strides = [1, 1]} : vector<8x128xf32> to vector<1x128xf32>
    %120 = vector.broadcast %119 : vector<1x128xf32> to vector<8x128xf32>
    %121 = arith.mulf %120, %113 : vector<8x128xf32>
    %c1_i32_54 = arith.constant 1 : i32
    %122 = vector.broadcast %c1_i32_54 : i32 to vector<8x1xi32>
    %123 = arith.cmpi sge, %3, %122 : vector<8x1xi32>
    %c1_i32_55 = arith.constant 1 : i32
    %124 = tpu.dynamic_rotate %113 by %c1_i32_55 dim 0 : vector<8x128xf32>, i32 -> vector<8x128xf32>
    %cst = arith.constant 0.000000e+00 : f32
    %125 = vector.shape_cast %123 : vector<8x1xi1> to vector<8x1xi1>
    %126 = vector.broadcast %125 : vector<8x1xi1> to vector<8x128xi1>
    %127 = vector.broadcast %cst : f32 to vector<8x128xf32>
    %128 = arith.select %126, %124, %127 : vector<8x128xi1>, vector<8x128xf32>
    %129 = vector.extract_strided_slice %114 {offsets = [1, 0], sizes = [1, 128], strides = [1, 1]} : vector<8x128xf32> to vector<1x128xf32>
    %130 = vector.broadcast %129 : vector<1x128xf32> to vector<8x128xf32>
    %131 = arith.mulf %130, %128 : vector<8x128xf32>
    %132 = arith.addf %121, %131 : vector<8x128xf32>
    %c2_i32_56 = arith.constant 2 : i32
    %133 = vector.broadcast %c2_i32_56 : i32 to vector<8x1xi32>
    %134 = arith.cmpi sge, %3, %133 : vector<8x1xi32>
    %c2_i32_57 = arith.constant 2 : i32
    %135 = tpu.dynamic_rotate %113 by %c2_i32_57 dim 0 : vector<8x128xf32>, i32 -> vector<8x128xf32>
    %cst_58 = arith.constant 0.000000e+00 : f32
    %136 = vector.shape_cast %134 : vector<8x1xi1> to vector<8x1xi1>
    %137 = vector.broadcast %136 : vector<8x1xi1> to vector<8x128xi1>
    %138 = vector.broadcast %cst_58 : f32 to vector<8x128xf32>
    %139 = arith.select %137, %135, %138 : vector<8x128xi1>, vector<8x128xf32>
    %140 = vector.extract_strided_slice %114 {offsets = [2, 0], sizes = [1, 128], strides = [1, 1]} : vector<8x128xf32> to vector<1x128xf32>
    %141 = vector.broadcast %140 : vector<1x128xf32> to vector<8x128xf32>
    %142 = arith.mulf %141, %139 : vector<8x128xf32>
    %143 = arith.addf %132, %142 : vector<8x128xf32>
    %c3_i32 = arith.constant 3 : i32
    %144 = vector.broadcast %c3_i32 : i32 to vector<8x1xi32>
    %145 = arith.cmpi sge, %3, %144 : vector<8x1xi32>
    %c3_i32_59 = arith.constant 3 : i32
    %146 = tpu.dynamic_rotate %113 by %c3_i32_59 dim 0 : vector<8x128xf32>, i32 -> vector<8x128xf32>
    %cst_60 = arith.constant 0.000000e+00 : f32
    %147 = vector.shape_cast %145 : vector<8x1xi1> to vector<8x1xi1>
    %148 = vector.broadcast %147 : vector<8x1xi1> to vector<8x128xi1>
    %149 = vector.broadcast %cst_60 : f32 to vector<8x128xf32>
    %150 = arith.select %148, %146, %149 : vector<8x128xi1>, vector<8x128xf32>
    %151 = vector.extract_strided_slice %114 {offsets = [3, 0], sizes = [1, 128], strides = [1, 1]} : vector<8x128xf32> to vector<1x128xf32>
    %152 = vector.broadcast %151 : vector<1x128xf32> to vector<8x128xf32>
    %153 = arith.mulf %152, %150 : vector<8x128xf32>
    %154 = arith.addf %143, %153 : vector<8x128xf32>
    %c4_i32 = arith.constant 4 : i32
    %155 = vector.broadcast %c4_i32 : i32 to vector<8x1xi32>
    %156 = arith.cmpi sge, %3, %155 : vector<8x1xi32>
    %c4_i32_61 = arith.constant 4 : i32
    %157 = tpu.dynamic_rotate %113 by %c4_i32_61 dim 0 : vector<8x128xf32>, i32 -> vector<8x128xf32>
    %cst_62 = arith.constant 0.000000e+00 : f32
    %158 = vector.shape_cast %156 : vector<8x1xi1> to vector<8x1xi1>
    %159 = vector.broadcast %158 : vector<8x1xi1> to vector<8x128xi1>
    %160 = vector.broadcast %cst_62 : f32 to vector<8x128xf32>
    %161 = arith.select %159, %157, %160 : vector<8x128xi1>, vector<8x128xf32>
    %162 = vector.extract_strided_slice %114 {offsets = [4, 0], sizes = [1, 128], strides = [1, 1]} : vector<8x128xf32> to vector<1x128xf32>
    %163 = vector.broadcast %162 : vector<1x128xf32> to vector<8x128xf32>
    %164 = arith.mulf %163, %161 : vector<8x128xf32>
    %165 = arith.addf %154, %164 : vector<8x128xf32>
    %c5_i32 = arith.constant 5 : i32
    %166 = vector.broadcast %c5_i32 : i32 to vector<8x1xi32>
    %167 = arith.cmpi sge, %3, %166 : vector<8x1xi32>
    %c5_i32_63 = arith.constant 5 : i32
    %168 = tpu.dynamic_rotate %113 by %c5_i32_63 dim 0 : vector<8x128xf32>, i32 -> vector<8x128xf32>
    %cst_64 = arith.constant 0.000000e+00 : f32
    %169 = vector.shape_cast %167 : vector<8x1xi1> to vector<8x1xi1>
    %170 = vector.broadcast %169 : vector<8x1xi1> to vector<8x128xi1>
    %171 = vector.broadcast %cst_64 : f32 to vector<8x128xf32>
    %172 = arith.select %170, %168, %171 : vector<8x128xi1>, vector<8x128xf32>
    %173 = vector.extract_strided_slice %114 {offsets = [5, 0], sizes = [1, 128], strides = [1, 1]} : vector<8x128xf32> to vector<1x128xf32>
    %174 = vector.broadcast %173 : vector<1x128xf32> to vector<8x128xf32>
    %175 = arith.mulf %174, %172 : vector<8x128xf32>
    %176 = arith.addf %165, %175 : vector<8x128xf32>
    %c6_i32 = arith.constant 6 : i32
    %177 = vector.broadcast %c6_i32 : i32 to vector<8x1xi32>
    %178 = arith.cmpi sge, %3, %177 : vector<8x1xi32>
    %c6_i32_65 = arith.constant 6 : i32
    %179 = tpu.dynamic_rotate %113 by %c6_i32_65 dim 0 : vector<8x128xf32>, i32 -> vector<8x128xf32>
    %cst_66 = arith.constant 0.000000e+00 : f32
    %180 = vector.shape_cast %178 : vector<8x1xi1> to vector<8x1xi1>
    %181 = vector.broadcast %180 : vector<8x1xi1> to vector<8x128xi1>
    %182 = vector.broadcast %cst_66 : f32 to vector<8x128xf32>
    %183 = arith.select %181, %179, %182 : vector<8x128xi1>, vector<8x128xf32>
    %184 = vector.extract_strided_slice %114 {offsets = [6, 0], sizes = [1, 128], strides = [1, 1]} : vector<8x128xf32> to vector<1x128xf32>
    %185 = vector.broadcast %184 : vector<1x128xf32> to vector<8x128xf32>
    %186 = arith.mulf %185, %183 : vector<8x128xf32>
    %187 = arith.addf %176, %186 : vector<8x128xf32>
    %c7_i32 = arith.constant 7 : i32
    %188 = vector.broadcast %c7_i32 : i32 to vector<8x1xi32>
    %189 = arith.cmpi sge, %3, %188 : vector<8x1xi32>
    %c7_i32_67 = arith.constant 7 : i32
    %190 = tpu.dynamic_rotate %113 by %c7_i32_67 dim 0 : vector<8x128xf32>, i32 -> vector<8x128xf32>
    %cst_68 = arith.constant 0.000000e+00 : f32
    %191 = vector.shape_cast %189 : vector<8x1xi1> to vector<8x1xi1>
    %192 = vector.broadcast %191 : vector<8x1xi1> to vector<8x128xi1>
    %193 = vector.broadcast %cst_68 : f32 to vector<8x128xf32>
    %194 = arith.select %192, %190, %193 : vector<8x128xi1>, vector<8x128xf32>
    %195 = vector.extract_strided_slice %114 {offsets = [7, 0], sizes = [1, 128], strides = [1, 1]} : vector<8x128xf32> to vector<1x128xf32>
    %196 = vector.broadcast %195 : vector<1x128xf32> to vector<8x128xf32>
    %197 = arith.mulf %196, %194 : vector<8x128xf32>
    %198 = arith.addf %187, %197 : vector<8x128xf32>
    %199 = vector.extract_strided_slice %116 {offsets = [0, 0, 0], sizes = [1, 8, 128], strides = [1, 1, 1]} : vector<8x8x128xf32> to vector<1x8x128xf32>
    %200 = vector.shape_cast %199 : vector<1x8x128xf32> to vector<8x128xf32>
    %201 = vector.extract_strided_slice %115 {offsets = [0, 0], sizes = [1, 128], strides = [1, 1]} : vector<8x128xf32> to vector<1x128xf32>
    %202 = vector.broadcast %201 : vector<1x128xf32> to vector<8x128xf32>
    %203 = arith.mulf %200, %202 : vector<8x128xf32>
    %204 = arith.addf %198, %203 : vector<8x128xf32>
    %205 = vector.extract_strided_slice %118 {offsets = [0, 0], sizes = [1, 128], strides = [1, 1]} : vector<8x128xf32> to vector<1x128xf32>
    %206 = vector.extract_strided_slice %115 {offsets = [0, 0], sizes = [1, 128], strides = [1, 1]} : vector<8x128xf32> to vector<1x128xf32>
    %207 = arith.mulf %205, %206 : vector<1x128xf32>
    %208 = vector.extract_strided_slice %117 {offsets = [0, 0, 0], sizes = [1, 8, 128], strides = [1, 1, 1]} : vector<8x8x128xf32> to vector<1x8x128xf32>
    %209 = vector.shape_cast %208 : vector<1x8x128xf32> to vector<8x128xf32>
    %210 = arith.mulf %209, %113 : vector<8x128xf32>
    %cst_69 = arith.constant dense<0.000000e+00> : vector<128xf32>
    %211 = vector.multi_reduction <add>, %210, %cst_69 [0] : vector<8x128xf32> to vector<128xf32>
    %212 = vector.shape_cast %211 : vector<128xf32> to vector<1x128xf32>
    %213 = arith.addf %207, %212 : vector<1x128xf32>
    %214 = vector.extract_strided_slice %116 {offsets = [1, 0, 0], sizes = [1, 8, 128], strides = [1, 1, 1]} : vector<8x8x128xf32> to vector<1x8x128xf32>
    %215 = vector.shape_cast %214 : vector<1x8x128xf32> to vector<8x128xf32>
    %216 = vector.extract_strided_slice %115 {offsets = [1, 0], sizes = [1, 128], strides = [1, 1]} : vector<8x128xf32> to vector<1x128xf32>
    %217 = vector.broadcast %216 : vector<1x128xf32> to vector<8x128xf32>
    %218 = arith.mulf %215, %217 : vector<8x128xf32>
    %219 = arith.addf %204, %218 : vector<8x128xf32>
    %220 = vector.extract_strided_slice %118 {offsets = [1, 0], sizes = [1, 128], strides = [1, 1]} : vector<8x128xf32> to vector<1x128xf32>
    %221 = vector.extract_strided_slice %115 {offsets = [1, 0], sizes = [1, 128], strides = [1, 1]} : vector<8x128xf32> to vector<1x128xf32>
    %222 = arith.mulf %220, %221 : vector<1x128xf32>
    %223 = vector.extract_strided_slice %117 {offsets = [1, 0, 0], sizes = [1, 8, 128], strides = [1, 1, 1]} : vector<8x8x128xf32> to vector<1x8x128xf32>
    %224 = vector.shape_cast %223 : vector<1x8x128xf32> to vector<8x128xf32>
    %225 = arith.mulf %224, %113 : vector<8x128xf32>
    %cst_70 = arith.constant dense<0.000000e+00> : vector<128xf32>
    %226 = vector.multi_reduction <add>, %225, %cst_70 [0] : vector<8x128xf32> to vector<128xf32>
    %227 = vector.shape_cast %226 : vector<128xf32> to vector<1x128xf32>
    %228 = arith.addf %222, %227 : vector<1x128xf32>
    %229 = vector.extract_strided_slice %116 {offsets = [2, 0, 0], sizes = [1, 8, 128], strides = [1, 1, 1]} : vector<8x8x128xf32> to vector<1x8x128xf32>
    %230 = vector.shape_cast %229 : vector<1x8x128xf32> to vector<8x128xf32>
    %231 = vector.extract_strided_slice %115 {offsets = [2, 0], sizes = [1, 128], strides = [1, 1]} : vector<8x128xf32> to vector<1x128xf32>
    %232 = vector.broadcast %231 : vector<1x128xf32> to vector<8x128xf32>
    %233 = arith.mulf %230, %232 : vector<8x128xf32>
    %234 = arith.addf %219, %233 : vector<8x128xf32>
    %235 = vector.extract_strided_slice %118 {offsets = [2, 0], sizes = [1, 128], strides = [1, 1]} : vector<8x128xf32> to vector<1x128xf32>
    %236 = vector.extract_strided_slice %115 {offsets = [2, 0], sizes = [1, 128], strides = [1, 1]} : vector<8x128xf32> to vector<1x128xf32>
    %237 = arith.mulf %235, %236 : vector<1x128xf32>
    %238 = vector.extract_strided_slice %117 {offsets = [2, 0, 0], sizes = [1, 8, 128], strides = [1, 1, 1]} : vector<8x8x128xf32> to vector<1x8x128xf32>
    %239 = vector.shape_cast %238 : vector<1x8x128xf32> to vector<8x128xf32>
    %240 = arith.mulf %239, %113 : vector<8x128xf32>
    %cst_71 = arith.constant dense<0.000000e+00> : vector<128xf32>
    %241 = vector.multi_reduction <add>, %240, %cst_71 [0] : vector<8x128xf32> to vector<128xf32>
    %242 = vector.shape_cast %241 : vector<128xf32> to vector<1x128xf32>
    %243 = arith.addf %237, %242 : vector<1x128xf32>
    %244 = vector.extract_strided_slice %116 {offsets = [3, 0, 0], sizes = [1, 8, 128], strides = [1, 1, 1]} : vector<8x8x128xf32> to vector<1x8x128xf32>
    %245 = vector.shape_cast %244 : vector<1x8x128xf32> to vector<8x128xf32>
    %246 = vector.extract_strided_slice %115 {offsets = [3, 0], sizes = [1, 128], strides = [1, 1]} : vector<8x128xf32> to vector<1x128xf32>
    %247 = vector.broadcast %246 : vector<1x128xf32> to vector<8x128xf32>
    %248 = arith.mulf %245, %247 : vector<8x128xf32>
    %249 = arith.addf %234, %248 : vector<8x128xf32>
    %250 = vector.extract_strided_slice %118 {offsets = [3, 0], sizes = [1, 128], strides = [1, 1]} : vector<8x128xf32> to vector<1x128xf32>
    %251 = vector.extract_strided_slice %115 {offsets = [3, 0], sizes = [1, 128], strides = [1, 1]} : vector<8x128xf32> to vector<1x128xf32>
    %252 = arith.mulf %250, %251 : vector<1x128xf32>
    %253 = vector.extract_strided_slice %117 {offsets = [3, 0, 0], sizes = [1, 8, 128], strides = [1, 1, 1]} : vector<8x8x128xf32> to vector<1x8x128xf32>
    %254 = vector.shape_cast %253 : vector<1x8x128xf32> to vector<8x128xf32>
    %255 = arith.mulf %254, %113 : vector<8x128xf32>
    %cst_72 = arith.constant dense<0.000000e+00> : vector<128xf32>
    %256 = vector.multi_reduction <add>, %255, %cst_72 [0] : vector<8x128xf32> to vector<128xf32>
    %257 = vector.shape_cast %256 : vector<128xf32> to vector<1x128xf32>
    %258 = arith.addf %252, %257 : vector<1x128xf32>
    %259 = vector.extract_strided_slice %116 {offsets = [4, 0, 0], sizes = [1, 8, 128], strides = [1, 1, 1]} : vector<8x8x128xf32> to vector<1x8x128xf32>
    %260 = vector.shape_cast %259 : vector<1x8x128xf32> to vector<8x128xf32>
    %261 = vector.extract_strided_slice %115 {offsets = [4, 0], sizes = [1, 128], strides = [1, 1]} : vector<8x128xf32> to vector<1x128xf32>
    %262 = vector.broadcast %261 : vector<1x128xf32> to vector<8x128xf32>
    %263 = arith.mulf %260, %262 : vector<8x128xf32>
    %264 = arith.addf %249, %263 : vector<8x128xf32>
    %265 = vector.extract_strided_slice %118 {offsets = [4, 0], sizes = [1, 128], strides = [1, 1]} : vector<8x128xf32> to vector<1x128xf32>
    %266 = vector.extract_strided_slice %115 {offsets = [4, 0], sizes = [1, 128], strides = [1, 1]} : vector<8x128xf32> to vector<1x128xf32>
    %267 = arith.mulf %265, %266 : vector<1x128xf32>
    %268 = vector.extract_strided_slice %117 {offsets = [4, 0, 0], sizes = [1, 8, 128], strides = [1, 1, 1]} : vector<8x8x128xf32> to vector<1x8x128xf32>
    %269 = vector.shape_cast %268 : vector<1x8x128xf32> to vector<8x128xf32>
    %270 = arith.mulf %269, %113 : vector<8x128xf32>
    %cst_73 = arith.constant dense<0.000000e+00> : vector<128xf32>
    %271 = vector.multi_reduction <add>, %270, %cst_73 [0] : vector<8x128xf32> to vector<128xf32>
    %272 = vector.shape_cast %271 : vector<128xf32> to vector<1x128xf32>
    %273 = arith.addf %267, %272 : vector<1x128xf32>
    %274 = vector.extract_strided_slice %116 {offsets = [5, 0, 0], sizes = [1, 8, 128], strides = [1, 1, 1]} : vector<8x8x128xf32> to vector<1x8x128xf32>
    %275 = vector.shape_cast %274 : vector<1x8x128xf32> to vector<8x128xf32>
    %276 = vector.extract_strided_slice %115 {offsets = [5, 0], sizes = [1, 128], strides = [1, 1]} : vector<8x128xf32> to vector<1x128xf32>
    %277 = vector.broadcast %276 : vector<1x128xf32> to vector<8x128xf32>
    %278 = arith.mulf %275, %277 : vector<8x128xf32>
    %279 = arith.addf %264, %278 : vector<8x128xf32>
    %280 = vector.extract_strided_slice %118 {offsets = [5, 0], sizes = [1, 128], strides = [1, 1]} : vector<8x128xf32> to vector<1x128xf32>
    %281 = vector.extract_strided_slice %115 {offsets = [5, 0], sizes = [1, 128], strides = [1, 1]} : vector<8x128xf32> to vector<1x128xf32>
    %282 = arith.mulf %280, %281 : vector<1x128xf32>
    %283 = vector.extract_strided_slice %117 {offsets = [5, 0, 0], sizes = [1, 8, 128], strides = [1, 1, 1]} : vector<8x8x128xf32> to vector<1x8x128xf32>
    %284 = vector.shape_cast %283 : vector<1x8x128xf32> to vector<8x128xf32>
    %285 = arith.mulf %284, %113 : vector<8x128xf32>
    %cst_74 = arith.constant dense<0.000000e+00> : vector<128xf32>
    %286 = vector.multi_reduction <add>, %285, %cst_74 [0] : vector<8x128xf32> to vector<128xf32>
    %287 = vector.shape_cast %286 : vector<128xf32> to vector<1x128xf32>
    %288 = arith.addf %282, %287 : vector<1x128xf32>
    %289 = vector.extract_strided_slice %116 {offsets = [6, 0, 0], sizes = [1, 8, 128], strides = [1, 1, 1]} : vector<8x8x128xf32> to vector<1x8x128xf32>
    %290 = vector.shape_cast %289 : vector<1x8x128xf32> to vector<8x128xf32>
    %291 = vector.extract_strided_slice %115 {offsets = [6, 0], sizes = [1, 128], strides = [1, 1]} : vector<8x128xf32> to vector<1x128xf32>
    %292 = vector.broadcast %291 : vector<1x128xf32> to vector<8x128xf32>
    %293 = arith.mulf %290, %292 : vector<8x128xf32>
    %294 = arith.addf %279, %293 : vector<8x128xf32>
    %295 = vector.extract_strided_slice %118 {offsets = [6, 0], sizes = [1, 128], strides = [1, 1]} : vector<8x128xf32> to vector<1x128xf32>
    %296 = vector.extract_strided_slice %115 {offsets = [6, 0], sizes = [1, 128], strides = [1, 1]} : vector<8x128xf32> to vector<1x128xf32>
    %297 = arith.mulf %295, %296 : vector<1x128xf32>
    %298 = vector.extract_strided_slice %117 {offsets = [6, 0, 0], sizes = [1, 8, 128], strides = [1, 1, 1]} : vector<8x8x128xf32> to vector<1x8x128xf32>
    %299 = vector.shape_cast %298 : vector<1x8x128xf32> to vector<8x128xf32>
    %300 = arith.mulf %299, %113 : vector<8x128xf32>
    %cst_75 = arith.constant dense<0.000000e+00> : vector<128xf32>
    %301 = vector.multi_reduction <add>, %300, %cst_75 [0] : vector<8x128xf32> to vector<128xf32>
    %302 = vector.shape_cast %301 : vector<128xf32> to vector<1x128xf32>
    %303 = arith.addf %297, %302 : vector<1x128xf32>
    %304 = vector.extract_strided_slice %116 {offsets = [7, 0, 0], sizes = [1, 8, 128], strides = [1, 1, 1]} : vector<8x8x128xf32> to vector<1x8x128xf32>
    %305 = vector.shape_cast %304 : vector<1x8x128xf32> to vector<8x128xf32>
    %306 = vector.extract_strided_slice %115 {offsets = [7, 0], sizes = [1, 128], strides = [1, 1]} : vector<8x128xf32> to vector<1x128xf32>
    %307 = vector.broadcast %306 : vector<1x128xf32> to vector<8x128xf32>
    %308 = arith.mulf %305, %307 : vector<8x128xf32>
    %309 = arith.addf %294, %308 : vector<8x128xf32>
    %310 = vector.extract_strided_slice %118 {offsets = [7, 0], sizes = [1, 128], strides = [1, 1]} : vector<8x128xf32> to vector<1x128xf32>
    %311 = vector.extract_strided_slice %115 {offsets = [7, 0], sizes = [1, 128], strides = [1, 1]} : vector<8x128xf32> to vector<1x128xf32>
    %312 = arith.mulf %310, %311 : vector<1x128xf32>
    %313 = vector.extract_strided_slice %117 {offsets = [7, 0, 0], sizes = [1, 8, 128], strides = [1, 1, 1]} : vector<8x8x128xf32> to vector<1x8x128xf32>
    %314 = vector.shape_cast %313 : vector<1x8x128xf32> to vector<8x128xf32>
    %315 = arith.mulf %314, %113 : vector<8x128xf32>
    %cst_76 = arith.constant dense<0.000000e+00> : vector<128xf32>
    %316 = vector.multi_reduction <add>, %315, %cst_76 [0] : vector<8x128xf32> to vector<128xf32>
    %317 = vector.shape_cast %316 : vector<128xf32> to vector<1x128xf32>
    %318 = arith.addf %312, %317 : vector<1x128xf32>
    %319 = tpu.concatenate %213, %228, %243, %258, %273, %288, %303, %318 in 0 : vector<1x128xf32>, vector<1x128xf32>, vector<1x128xf32>, vector<1x128xf32>, vector<1x128xf32>, vector<1x128xf32>, vector<1x128xf32>, vector<1x128xf32> -> vector<8x128xf32>
    %c0_77 = arith.constant 0 : index
    %c0_78 = arith.constant 0 : index
    %320 = vector.load %arg12[%c0_77, %c0_78] : memref<8x128xf32, #tpu.memory_space<vmem>>, vector<8x128xf32>
    tpu.vector_store %arg12[%c0_77, %c0_78], %319 {strides = array<i32>} : memref<8x128xf32, #tpu.memory_space<vmem>>, vector<8x128xf32>,
    %c0_79 = arith.constant 0 : index
    %c0_80 = arith.constant 0 : index
    %321 = vector.load %arg9[%c0_79, %c0_80] : memref<1x128xf32, #tpu.memory_space<vmem>>, vector<1x128xf32>
    %322 = vector.broadcast %321 : vector<1x128xf32> to vector<8x128xf32>
    %323 = arith.mulf %113, %322 : vector<8x128xf32>
    %324 = arith.addf %309, %323 : vector<8x128xf32>
    %325 = arith.mulf %324, %41 : vector<8x128xf32>
    %c0_81 = arith.constant 0 : index
    %c0_82 = arith.constant 0 : index
    %c0_83 = arith.constant 0 : index
    %326 = vector.load %arg10[%c0_81, %c0_82, %c0_83] : memref<1x8x128xf32, #tpu.memory_space<vmem>>, vector<1x8x128xf32>
    %327 = vector.shape_cast %326 : vector<1x8x128xf32> to vector<8x128xf32>
    %328 = vector.shape_cast %325 : vector<8x128xf32> to vector<1x8x128xf32>
    tpu.vector_store %arg10[%c0_81, %c0_82, %c0_83], %328 {strides = array<i32>} : memref<1x8x128xf32, #tpu.memory_space<vmem>>, vector<1x8x128xf32>,
    return
  }
  func.func @transform_0(%arg0: i32, %arg1: i32) -> (i32, i32, i32, i32) {
    %c0_i32 = arith.constant 0 : i32
    %c0_i32_0 = arith.constant 0 : i32
    %c0_i32_1 = arith.constant 0 : i32
    return %arg0, %c0_i32, %arg1, %c0_i32_0 : i32, i32, i32, i32
  }
  func.func @transform_1(%arg0: i32, %arg1: i32) -> (i32, i32, i32) {
    %c0_i32 = arith.constant 0 : i32
    %c0_i32_0 = arith.constant 0 : i32
    %c0_i32_1 = arith.constant 0 : i32
    %c0_i32_2 = arith.constant 0 : i32
    return %c0_i32, %c0_i32_0, %c0_i32_1 : i32, i32, i32
  }
  func.func @transform_2(%arg0: i32, %arg1: i32) -> (i32, i32, i32) {
    %c0_i32 = arith.constant 0 : i32
    %c0_i32_0 = arith.constant 0 : i32
    %c0_i32_1 = arith.constant 0 : i32
    %c0_i32_2 = arith.constant 0 : i32
    return %c0_i32, %c0_i32_0, %c0_i32_1 : i32, i32, i32
  }
  func.func @transform_3(%arg0: i32, %arg1: i32) -> (i32, i32) {
    %c0_i32 = arith.constant 0 : i32
    %c0_i32_0 = arith.constant 0 : i32
    %c0_i32_1 = arith.constant 0 : i32
    return %c0_i32, %c0_i32_0 : i32, i32
  }
  func.func @transform_4(%arg0: i32, %arg1: i32) -> (i32, i32, i32) {
    %c0_i32 = arith.constant 0 : i32
    %c0_i32_0 = arith.constant 0 : i32
    %c0_i32_1 = arith.constant 0 : i32
    %c0_i32_2 = arith.constant 0 : i32
    return %c0_i32, %c0_i32_0, %c0_i32_1 : i32, i32, i32
  }
  func.func @transform_5(%arg0: i32, %arg1: i32) -> (i32, i32, i32) {
    %c0_i32 = arith.constant 0 : i32
    %c0_i32_0 = arith.constant 0 : i32
    %c0_i32_1 = arith.constant 0 : i32
    %c0_i32_2 = arith.constant 0 : i32
    return %c0_i32, %c0_i32_0, %c0_i32_1 : i32, i32, i32
  }
  func.func @transform_6(%arg0: i32, %arg1: i32) -> (i32, i32) {
    %c0_i32 = arith.constant 0 : i32
    %c0_i32_0 = arith.constant 0 : i32
    %c0_i32_1 = arith.constant 0 : i32
    return %c0_i32, %c0_i32_0 : i32, i32
  }
  func.func @transform_7(%arg0: i32, %arg1: i32) -> (i32, i32) {
    %c0_i32 = arith.constant 0 : i32
    %c0_i32_0 = arith.constant 0 : i32
    %c0_i32_1 = arith.constant 0 : i32
    return %c0_i32, %c0_i32_0 : i32, i32
  }
  func.func @transform_8(%arg0: i32, %arg1: i32) -> (i32, i32, i32) {
    %c0_i32 = arith.constant 0 : i32
    %c0_i32_0 = arith.constant 0 : i32
    return %arg0, %arg1, %c0_i32 : i32, i32, i32
  }
}

</mosaic_0001>

<bundles_post_ra>
// kernel: hyena_cascade_forward.1
= control target key start
LH: loop header
LB: loop body
LE: loop exit
PB: predicated region body
PF: predicated region fallthrough
CT: control target
= control target key end

     0   :  { %s1430_s0 = inlined_call_operand.vmem [shape: f32[2,3,16,128], index: 0, kind: input, shape index: {}]   ;;  %s1431_s1 = inlined_call_operand.vmem [shape: f32[3,3,128], index: 1, kind: input, shape index: {}]   ;;  %s1432_s2 = inlined_call_operand.vmem [shape: f32[3,1,128], index: 2, kind: input, shape index: {}]   ;;  %s1433_s3 = inlined_call_operand.vmem [shape: f32[8,128], index: 3, kind: input, shape index: {}]   ;;  %s1434_s4 = inlined_call_operand.vmem [shape: f32[8,8,128], index: 4, kind: input, shape index: {}]   ;;  %s1435_s5 = inlined_call_operand.vmem [shape: f32[8,8,128], index: 5, kind: input, shape index: {}]   ;;  %s1436_s6 = inlined_call_operand.vmem [shape: f32[8,128], index: 6, kind: input, shape index: {}]   ;;  %s1437_s7 = inlined_call_operand.vmem [shape: f32[1,128], index: 7, kind: input, shape index: {}]   ;;  %s1438_s8 = inlined_call_operand.hbm [shape: f32[2,16,128], index: 8, kind: output, shape index: {}]  }
   0x1   :  { %1441 = sst [smem:[#allocation10_spill]] %s1430_s0 }
   0x2   :  { %13 = vsyncpa [#allocation6], 0 }
   0x3   :  { %15 = vsyncpa [#allocation6 + $0x1], 0  ;;  %s1059_s27 = smov 0   ;;  %s1061_s28 = smov 0  }
   0x4   :  { %s1063_s29 = smov 0   ;;  %s1065_s30 = smov 0  }
   0x5   :  { %s1067_s9 = smov 0   ;;  %s1069_s10 = smov 0  }
   0x6   :  { %s1071_s11 = smov 0   ;;  %s1073_s12 = smov 0  }
   0x7 LB: > { %s820_s13 = sadd.s32 4294967295, %s1010_s12   ;;  %s821_s14 = sadd.s32 4294967294, %s1010_s12   ;;  %s1010_s12 = sphi %s1073_s12, %s21_s12   ;;  %s1006_s11 = sphi %s1071_s11, %s1456_s11   ;;  %s1002_s10 = sphi %s1069_s10, %s1455_s10   ;;  %s998_s9 = sphi %s1067_s9, %s1454_s9   ;;  %s994_s30 = sphi %s1065_s30, %s1453_s30   ;;  %s990_s29 = sphi %s1063_s29, %s1452_s29   ;;  %s986_s28 = sphi %s1061_s28, %s1451_s28   ;;  %s982_s27 = sphi %s1059_s27, %s1450_s27  }
   0x8   : > { %s30_s15 = sadd.s32 1, %s1002_s10  ;;  %s33_s16 = sadd.s32 1, %s1006_s11 }
   0x9   : > { %p31_p0 = scmp.ge.s32.totalorder %s30_s15, 2  ;;  %p49_p1 = scmp.ne.s32.totalorder %s990_s29, %s986_s28 }
   0xa   : > { %p50_p2 = scmp.eq.s32.totalorder %s1010_s12, 0  ;;  %p228_p5 = scmp.eq.s32.totalorder %s820_s13, 3 }
   0xb   : > { %s1458_s15 = smov (%p31_p0, %s30_s15), 0  ;;  %s1460_s16 = smov (!%p31_p0, %s33_s16), %s1006_s11 }
   0xc   : > { %1442 = sst [smem:[#allocation8_spill]] %s1458_s15  ;;  %s38_s17 = ssub.s32 %s1002_s10, %s1458_s15 }
   0xd   : > { %p1111_p3 = por %p50_p2, %p49_p1  ;;  %p35_p4 = scmp.ge.s32.totalorder %s1460_s16, 2 }
   0xe   : > { %p233_p6 = scmp.ne.s32.totalorder %s986_s28, %s982_s27  ;;  %p234_p7 = scmp.eq.s32.totalorder %s821_s14, 3 }
   0xf   : > { %s1462_s16 = smov (%p35_p4, %s1460_s16), 0  ;;  %p1119_p8 = por %p228_p5, %p49_p1 }
  0x10   : > { %1444 = sst [smem:[#allocation9_spill]] %s1462_s16  ;;  %p1123_p9 = por %p234_p7, %p233_p6 }
  0x11   : > { %s37_s21 = ssub.s32 %s1006_s11, %s1462_s16  ;;  %s42_s23 = sadd.s32 1, %s990_s29 }
  0x12   : > { %s39_s22 = sor.u32 %s38_s17, %s37_s21  ;;  %p823_p11 = scmp.ge.s32.totalorder %s1010_s12, 4 }
  0x13   : > { %p40_p10 = scmp.eq.s32.totalorder %s39_s22, 0 }
  0x14   : > { %271 = sbr.rel (%p823_p11) target bundleno = 38 (0x26), region = 44 }
  0x15   : > { %s1131_s24 = scalar_select %p40_p10, %s990_s29, %s42_s23  }
  0x1b   : > { %274 = sbr.rel (!%p1111_p3) target bundleno = 38 (0x26), region = 48  ;;  %s276_s25 = sand.u32 (%p1111_p3), 1, %s990_s29  }
  0x1c   : > { %s842_s26 = smul.u32 (%p1111_p3), 6, %s1006_s11  ;;  %s1447_s0 = sld [smem:[#allocation10_spill]] (%p1111_p3) }
  0x1d   : > { %s841_s13 = smul.u32 (%p1111_p3), 24, %s276_s25 }
  0x1e   : > { %s280_s14 = sadd.s32 (%p1111_p3), %s1002_s10, %s842_s26 }
  0x1f   : > { %s824_s15 = sshll.u32 (%p1111_p3), %s280_s14, 3  ;;  %s278_s22 = scalar_lea.vmem (%p1111_p3), [#allocation4], %s841_s13 }
  0x22   : > { %s282_s21 = scalar_lea.vmem %s1447_s0, %s824_s15 }
  0x23   : > { %v314_v0 = vld [vmem:[%s282_s21] sm:$0xff]  ;;  %v316_v1 = vld [vmem:[%s282_s21 + $0x10] sm:$0xff] }
  0x24   : > { %v318_v2 = vld [vmem:[%s282_s21 + $0x20] sm:$0xff]  ;;  %315 = vst [vmem:[%s278_s22] sm:$0xff] %v314_v0  ;;  %317 = vst [vmem:[%s278_s22 + $0x8] sm:$0xff] %v316_v1 }
  0x25   : > { %319 = vst [vmem:[%s278_s22 + $0x10] sm:$0xff] %v318_v2 }
  0x26 PF: > { %p825_p12 = scmp.ge.s32.totalorder %s1010_s12, 1  ;;  %p324_p13 = scmp.lt.s32.totalorder %s1010_s12, 5 }
  0x28   : > { %p325_p0 = pnand %p825_p12, %p324_p13 }
  0x29   : > { %s1145_s18 = sand.u32 (!%p325_p0), 1, %s986_s28   ;;  %p827_p1 = scmp.ne.s32.totalorder (!%p325_p0), %s994_s30, 0 }
  0x2a   : > { %328 = sbr.rel (%p325_p0) target bundleno = 129 (0x81), region = 86  ;;  %s826_s16 = sshll.u32 (!%p325_p0), %s1145_s18, 3 }
  0x2b   : > { %s843_s15 = smul.u32 (!%p325_p0), 24, %s1145_s18  ;;  %s1149_s25 = scalar_lea.vmem (!%p325_p0), [#allocation5], %s826_s16 }
  0x2d   : > { %s333_s23 = scalar_lea.vmem (!%p325_p0), [#allocation4], %s843_s15 }
  0x31   : > { %367 = sbr.rel (%p827_p1) target bundleno = 56 (0x38), region = 94  ;;  %v1012_v3 = vmov (!%p827_p1), 0.0  }
  0x32   : > { %368 = vst [vmem:[#allocation2] sm:$0xff] (!%p827_p1), %v1012_v3  ;;  %369 = vst [vmem:[#allocation2 + $0x8] sm:$0xff] (!%p827_p1), %v1012_v3 }
  0x33   : > { %370 = vst [vmem:[#allocation2 + $0x10] sm:$0xff] (!%p827_p1), %v1012_v3  ;;  %371 = vst [vmem:[#allocation3] sm:$0xff] (!%p827_p1), %v1012_v3 }
  0x38 PF: > { %v372_v4 = vlaneseq  ;;  %v374_v5 = vld [vmem:[%s333_s23] sm:$0xff]  ;;  %v375_v6 = vld [vmem:[%s333_s23 + $0x8] sm:$0xff]  ;;  %v376_v7 = vld [vmem:[%s333_s23 + $0x10] sm:$0xff]  ;;  %vm698_vm7 = vcmask 1040384   ;;  %vm700_vm8 = vcmask 1041408   ;;  %vm702_vm9 = vcmask 1042432  }
  0x39   : > { %v377_v8 = vld [vmem:[#allocation2] sm:$0xff]  ;;  %v378_v9 = vld [vmem:[#allocation2 + $0x8] sm:$0xff]  ;;  %v434_v11 = vrot.slane %v375_v6, 7  ;;  %v443_v23 = vrot.slane %v375_v6, 6  ;;  %v394_v26 = vrot.slane %v374_v5, 7  ;;  %v406_v27 = vrot.slane %v374_v5, 6 }
  0x3a   : > { %v379_v10 = vld [vmem:[#allocation2 + $0x10] sm:$0xff]  ;;  %v1152_v12 = vshrl.u32 %v372_v4, 7  ;;  %486 = vst [vmem:[#allocation2] sm:$0xff] %v374_v5  ;;  %487 = vst [vmem:[#allocation2 + $0x8] sm:$0xff] %v375_v6  ;;  %v829_v13 = vld [vmem:[%s1431_s1 + $0x4] sm:$0x7] }
  0x3b   : > { %488 = vst [vmem:[#allocation2 + $0x10] sm:$0xff] %v376_v7  ;;  %v435_v14 = vrot.slane %v378_v9, 7  ;;  %v832_v21 = vld [vmem:[%s1431_s1 + $0x8] sm:$0x7]  ;;  %v831_v22 = vld [vmem:[%s1432_s2 + $0x1] ss:$0 sm:$0xff] }
  0x3c   : > { %v1158_v15 = vsub.s32 0, %v1152_v12  ;;  %vm396_vm0 = vcmp.ge.s32.totalorder %v1152_v12, 1  ;;  %v1162_v16 = vsub.s32 1, %v1152_v12  ;;  %v1165_v17 = vsub.s32 2, %v1152_v12  ;;  %v1182_v30 = vld [vmem:[%s1431_s1] sm:$0x7] }
  0x3d   : > { %v436_v18 = vsel %vm396_vm0, %v434_v11, %v435_v14  ;;  %vm408_vm1 = vcmp.ge.s32.totalorder %v1152_v12, 2  ;;  %v444_v24 = vrot.slane %v378_v9, 6  ;;  %v395_v31 = vrot.slane %v377_v8, 7  ;;  %v834_v38 = vld [vmem:[%s1432_s2 + $0x2] ss:$0 sm:$0xff]  ;;  %s837_s14 = sshll.u32 %s998_s9, 1 }
  0x3e   : > { %v425_v19 = vrot.slane %v829_v13, %v1158_v15  ;;  %v440_v20 = vrot.slane %v829_v13, %v1162_v16  ;;  %v449_v25 = vrot.slane %v829_v13, %v1165_v17  ;;  %v459_v33 = vrot.slane %v832_v21, %v1158_v15  ;;  %v490_v54 = vld [vmem:[%s1433_s3] sm:$0xff]  ;;  %s736_s17 = sadd.s32 %s994_s30, %s837_s14  ;;  %s740_s21 = sshll.u32 %s1149_s25, 4  ;;  %s1376_s21 = int_to_ptr.vmem [resolvable:$true] %s740_s21 }
  0x3f   : > { %v445_v32 = vsel %vm408_vm1, %v443_v23, %v444_v24  ;;  %v468_v34 = vrot.slane %v376_v7, 7  ;;  %v407_v35 = vrot.slane %v377_v8, 6  ;;  %v469_v39 = vrot.slane %v379_v10, 7  ;;  %s838_s9 = sshll.u32 %s736_s17, 7  ;;  %s725_s16 = scalar_lea.sflag [#allocation6], %s1145_s18 }
  0x40   : > { %v426_v28 = vmul.f32 %v425_v19, %v375_v6  ;;  %v441_v29 = vmul.f32 %v440_v20, %v436_v18  ;;  %v450_v37 = vmul.f32 %v449_v25, %v445_v32  ;;  %v460_v40 = vmul.f32 %v459_v33, %v376_v7  ;;  %s1374_s15 = scalar_lea.hbm %s1438_s8, %s838_s9  ;;  %s916_s23 = scalar_lea.vmem %s1376_s21, 128 }
  0x41   : > { %v474_v41 = vrot.slane %v832_v21, %v1162_v16  ;;  %v477_v42 = vrot.slane %v376_v7, 6  ;;  %v478_v43 = vrot.slane %v379_v10, 6  ;;  %v385_v44 = vrot.slane %v1182_v30, %v1158_v15  ;;  %v1224_v7 = vld [vmem:[#allocation3] sm:$0xff]  ;;  %p917_p2 = scmp.ne.s32.totalorder %s1376_s21, %s916_s23  ;;  %s1013_s26 = smov [#allocation5]  }
  0x42   : > { %v433_v36 = vadd.f32 %v831_v22, %v426_v28  ;;  %v470_v46 = vsel %vm396_vm0, %v468_v34, %v469_v39  ;;  %v483_v47 = vrot.slane %v832_v21, %v1165_v17  ;;  %v467_v48 = vadd.f32 %v834_v38, %v460_v40  ;;  %v492_v28 = vld [vmem:[%s1434_s4] sm:$0xff]  ;;  %s920_s0 = sshll.u32 %s1013_s26, 4  ;;  %s921_s0 = int_to_ptr.vmem [resolvable:$false] %s920_s0 }
  0x43   : > { %v475_v49 = vmul.f32 %v474_v41, %v470_v46  ;;  %v479_v50 = vsel %vm408_vm1, %v477_v42, %v478_v43  ;;  %v399_v51 = vsel %vm396_vm0, %v394_v26, %v395_v31  ;;  %v1202_v52 = vsel %vm408_vm1, %v406_v27, %v407_v35  ;;  %v828_v27 = vld [vmem:[%s1432_s2] ss:$0 sm:$0xff]  ;;  %v501_v42 = vld [vmem:[%s1435_s5 + $0x8] sm:$0xff]  ;;  %v495_v46 = vld [vmem:[%s1434_s4 + $0x18] sm:$0xff]  ;;  %p918_p3 = pnand %p917_p2, %p1119_p8  ;;  %s922_s13 = scalar_lea.vmem %s921_s0, 256 }
  0x44   : > { %v442_v45 = vadd.f32 %v441_v29, %v433_v36  ;;  %v484_v53 = vmul.f32 %v483_v47, %v479_v50  ;;  %v403_v55 = vrot.slane %v1182_v30, %v1162_v16  ;;  %v537_v58 = vsub.s32 3, %v1152_v12  ;;  %v500_v41 = vld [vmem:[%s1435_s5] sm:$0xff]  ;;  %p923_p5 = scmp.lt.s32.totalorder %s1376_s21, %s921_s0  ;;  %p924_p6 = scmp.lt.s32.totalorder %s922_s13, %s916_s23 }
  0x45   : > { %v476_v57 = vadd.f32 %v475_v49, %v467_v48  ;;  %v386_v59 = vmul.f32 %v385_v44, %v374_v5  ;;  %v415_v60 = vrot.slane %v1182_v30, %v1165_v17  ;;  %v548_v61 = vsub.s32 4, %v1152_v12  ;;  %v508_v49 = vld [vmem:[%s1436_s6] sm:$0xff]  ;;  %p919_p4 = pneg %p918_p3 }
  0x46   : > { %v451_v56 = vadd.f32 %v450_v37, %v442_v45  ;;  %v559_v62 = vsub.s32 5, %v1152_v12  ;;  %v512_v0 = vrot.slane %v490_v54, %v1158_v15  ;;  %v519_v1 = vrot.slane %v490_v54, %v1162_v16  ;;  %v493_v37 = vld [vmem:[%s1434_s4 + $0x8] sm:$0xff]  ;;  %v494_v45 = vld [vmem:[%s1434_s4 + $0x10] sm:$0xff]  ;;  %p925_p7 = por %p924_p6, %p923_p5 }
  0x47   : > { %v485_v63 = vadd.f32 %v484_v53, %v476_v57  ;;  %v570_v2 = vsub.s32 6, %v1152_v12  ;;  %v527_v3 = vrot.slane %v490_v54, %v1165_v17  ;;  %vm530_vm2 = vcmp.ge.s32.totalorder %v1152_v12, 3 }
  0x48   : > { %vm541_vm3 = vcmp.ge.s32.totalorder %v1152_v12, 4  ;;  %vm552_vm4 = vcmp.ge.s32.totalorder %v1152_v12, 5  ;;  %v538_v5 = vrot.slane %v490_v54, %v537_v58  ;;  %v549_v6 = vrot.slane %v490_v54, %v548_v61  ;;  %p926_p10 = pnand %p925_p7, %p919_p4 }
  0x49   : > { %v1221_v4 = vmul.f32 %v485_v63, %v451_v56  ;;  %vm563_vm5 = vcmp.ge.s32.totalorder %v1152_v12, 6  ;;  %v560_v8 = vrot.slane %v490_v54, %v559_v62  ;;  %v571_v9 = vrot.slane %v490_v54, %v570_v2  ;;  %v503_v56 = vld [vmem:[%s1435_s5 + $0x18] sm:$0xff]  ;;  %v506_v63 = vld [vmem:[%s1435_s5 + $0x30] sm:$0xff] }
  0x4a   : > { %vm574_vm6 = vcmp.ge.s32.totalorder %v1152_v12, 7  ;;  %v581_v10 = vsub.s32 7, %v1152_v12  ;;  %v588_v26 = vrot.slane %v1224_v7, %v1158_v15  ;;  %v603_v33 = vrot.slane %v1224_v7, %v1162_v16 }
  0x4b   : > { %v513_v11 = vmul.f32 %v512_v0, %v1221_v4  ;;  %v514_v13 = vrot.slane %v1221_v4, 7  ;;  %v522_v14 = vrot.slane %v1221_v4, 6  ;;  %v531_v18 = vrot.slane %v1221_v4, 5 }
  0x4c   : > { %v542_v19 = vrot.slane %v1221_v4, 4  ;;  %v553_v20 = vrot.slane %v1221_v4, 3  ;;  %v564_v21 = vrot.slane %v1221_v4, 2  ;;  %v575_v22 = vrot.slane %v1221_v4, 1 }
  0x4d   : > { %v515_v23 = vsel %vm396_vm0, %v514_v13, 0.0  ;;  %v523_v24 = vsel %vm408_vm1, %v522_v14, 0.0  ;;  %v534_v25 = vsel %vm530_vm2, %v531_v18, 0.0  ;;  %v582_v32 = vrot.slane %v490_v54, %v581_v10 }
  0x4e   : > { %v520_v29 = vmul.f32 %v519_v1, %v515_v23  ;;  %v528_v31 = vmul.f32 %v527_v3, %v523_v24  ;;  %v545_v34 = vsel %vm541_vm3, %v542_v19, 0.0  ;;  %v556_v15 = vsel %vm552_vm4, %v553_v20, 0.0 }
  0x4f   : > { %v567_v35 = vsel %vm563_vm5, %v564_v21, 0.0  ;;  %v617_v36 = vrot.slane %v1224_v7, %v1165_v17  ;;  %v539_v39 = vmul.f32 %v538_v5, %v534_v25  ;;  %v578_v16 = vsel %vm574_vm6, %v575_v22, 0.0 }
  0x50   : > { %v521_v38 = vadd.f32 %v520_v29, %v513_v11  ;;  %v631_v40 = vrot.slane %v1224_v7, %v537_v58  ;;  %v1278_v43 = vadd.f32 %v828_v27, %v386_v59  ;;  %v1280_v44 = vmul.f32 %v403_v55, %v399_v51  ;;  %v502_v55 = vld [vmem:[%s1435_s5 + $0x10] sm:$0xff]  ;;  %v504_v59 = vld [vmem:[%s1435_s5 + $0x20] sm:$0xff] }
  0x51   : > { %v589_v47 = vmul.f32 %v588_v26, %v492_v28  ;;  %v1289_v48 = vrot.slane %v1224_v7, %v548_v61  ;;  %v550_v53 = vmul.f32 %v549_v6, %v545_v34  ;;  %v561_v51 = vmul.f32 %v560_v8, %v556_v15  ;;  %v505_v61 = vld [vmem:[%s1435_s5 + $0x28] sm:$0xff] }
  0x52   : > { %v529_v50 = vadd.f32 %v528_v31, %v521_v38  ;;  %v572_v54 = vmul.f32 %v571_v9, %v567_v35  ;;  %v583_v57 = vmul.f32 %v582_v32, %v578_v16  ;;  %v604_v58 = vmul.f32 %v603_v33, %v493_v37 }
  0x53   : > { %v592_v0 = vmul.f32 %v500_v41, %v1221_v4  ;;  %v606_v1 = vmul.f32 %v501_v42, %v1221_v4  ;;  %v618_v5 = vmul.f32 %v617_v36, %v494_v45  ;;  %v1311_v6 = vmul.f32 %v631_v40, %v495_v46 }
  0x54   : > { %v540_v3 = vadd.f32 %v539_v39, %v529_v50  ;;  %v1314_v8 = vmul.f32 %v508_v49, %v1224_v7  ;;  %v620_v13 = vmul.f32 %v502_v55, %v1221_v4  ;;  %v634_v14 = vmul.f32 %v503_v56, %v1221_v4 }
  0x55   : > { %v593_v9 = vrot.slane %v592_v0, 4  ;;  %v607_v11 = vrot.slane %v606_v1, 4  ;;  %v648_v19 = vmul.f32 %v504_v59, %v1221_v4  ;;  %v662_v20 = vmul.f32 %v505_v61, %v1221_v4  ;;  %v496_v61 = vld [vmem:[%s1434_s4 + $0x20] sm:$0xff] }
  0x56   : > { %v551_v18 = vadd.f32 %v550_v53, %v540_v3  ;;  %v676_v21 = vmul.f32 %v506_v63, %v1221_v4  ;;  %v621_v24 = vrot.slane %v620_v13, 4  ;;  %v635_v25 = vrot.slane %v634_v14, 4 }
  0x57   : > { %v594_v22 = vadd.f32 %v593_v9, %v592_v0  ;;  %v608_v23 = vadd.f32 %v607_v11, %v606_v1  ;;  %v649_v27 = vrot.slane %v648_v19, 4  ;;  %v663_v28 = vrot.slane %v662_v20, 4  ;;  %v507_v9 = vld [vmem:[%s1435_s5 + $0x38] sm:$0xff] }
  0x58   : > { %v562_v26 = vadd.f32 %v561_v51, %v551_v18  ;;  %v677_v29 = vrot.slane %v676_v21, 4  ;;  %v622_v33 = vadd.f32 %v621_v24, %v620_v13  ;;  %v636_v34 = vadd.f32 %v635_v25, %v634_v14  ;;  %v498_v24 = vld [vmem:[%s1434_s4 + $0x30] sm:$0xff] }
  0x59   : > { %v595_v31 = vrot.slane %v594_v22, 2  ;;  %v609_v32 = vrot.slane %v608_v23, 2  ;;  %v650_v35 = vadd.f32 %v649_v27, %v648_v19  ;;  %v664_v36 = vadd.f32 %v663_v28, %v662_v20 }
  0x5a   : > { %v573_v15 = vadd.f32 %v572_v54, %v562_v26  ;;  %v678_v37 = vadd.f32 %v677_v29, %v676_v21  ;;  %v623_v16 = vrot.slane %v622_v33, 2  ;;  %v637_v40 = vrot.slane %v636_v34, 2 }
  0x5b   : > { %v596_v38 = vadd.f32 %v595_v31, %v594_v22  ;;  %v610_v39 = vadd.f32 %v609_v32, %v608_v23  ;;  %v651_v42 = vrot.slane %v650_v35, 2  ;;  %v665_v45 = vrot.slane %v664_v36, 2  ;;  %v499_v31 = vld [vmem:[%s1434_s4 + $0x38] sm:$0xff] }
  0x5c   : > { %v584_v41 = vadd.f32 %v583_v57, %v573_v15  ;;  %v679_v46 = vrot.slane %v678_v37, 2  ;;  %v624_v53 = vadd.f32 %v623_v16, %v622_v33  ;;  %v638_v51 = vadd.f32 %v637_v40, %v636_v34 }
  0x5d   : > { %v597_v49 = vrot.slane %v596_v38, 1  ;;  %v611_v50 = vrot.slane %v610_v39, 1  ;;  %v659_v54 = vrot.slane %v1224_v7, %v559_v62  ;;  %v652_v56 = vadd.f32 %v651_v42, %v650_v35  ;;  %v497_v62 = vld [vmem:[%s1434_s4 + $0x28] sm:$0xff] }
  0x5e   : > { %v590_v55 = vadd.f32 %v589_v47, %v584_v41  ;;  %v666_v59 = vadd.f32 %v665_v45, %v664_v36  ;;  %v625_v0 = vrot.slane %v624_v53, 1  ;;  %v639_v1 = vrot.slane %v638_v51, 1 }
  0x5f   : > { %v598_v57 = vadd.f32 %v597_v49, %v596_v38  ;;  %v612_v63 = vadd.f32 %v611_v50, %v610_v39  ;;  %v653_v47 = vrot.slane %v652_v56, 1  ;;  %v680_v13 = vadd.f32 %v679_v46, %v678_v37 }
  0x60   : > { %v605_v3 = vadd.f32 %v604_v58, %v590_v55  ;;  %v667_v11 = vrot.slane %v666_v59, 1  ;;  %v626_v19 = vadd.f32 %v625_v0, %v624_v53  ;;  %v640_v20 = vadd.f32 %v639_v1, %v638_v51 }
  0x61   : > { %v599_v14 = vadd.f32 %v598_v57, %v1314_v8  ;;  %v613_v18 = vadd.f32 %v612_v63, %v1314_v8  ;;  %v646_v58 = vmul.f32 %v1289_v48, %v496_v61  ;;  %v673_v22 = vrot.slane %v1224_v7, %v570_v2 }
  0x62   : > { %v619_v21 = vadd.f32 %v618_v5, %v605_v3  ;;  %v654_v23 = vadd.f32 %v653_v47, %v652_v56  ;;  %v627_v25 = vadd.f32 %v626_v19, %v1314_v8  ;;  %v641_v26 = vadd.f32 %v640_v20, %v1314_v8 }
  0x63   : > { %v690_v27 = vmul.f32 %v507_v9, %v1221_v4  ;;  %v699_v28 = vsel %vm698_vm7, %v599_v14, %v613_v18  ;;  %v660_v48 = vmul.f32 %v659_v54, %v497_v62  ;;  %v687_v2 = vrot.slane %v1224_v7, %v581_v10  ;;  %v835_v7 = vld [vmem:[%s1437_s7] ss:$0 sm:$0xff] }
  0x64   : > { %v633_v5 = vadd.f32 %v1311_v6, %v619_v21  ;;  %v681_v29 = vrot.slane %v680_v13, 1  ;;  %v668_v32 = vadd.f32 %v667_v11, %v666_v59  ;;  %v701_v34 = vsel %vm700_vm8, %v699_v28, %v627_v25 }
  0x65   : > { %v691_v33 = vrot.slane %v690_v27, 4  ;;  %v674_v35 = vmul.f32 %v673_v22, %v498_v24  ;;  %v655_v36 = vadd.f32 %v654_v23, %v1314_v8  ;;  %v416_v12 = vmul.f32 %v415_v60, %v1202_v52 }
  0x66   : > { %v647_v15 = vadd.f32 %v646_v58, %v633_v5  ;;  %v703_v6 = vsel %vm702_vm9, %v701_v34, %v641_v26  ;;  %vm704_vm10 = vcmask 1043456   ;;  %v405_v37 = vadd.f32 %v1280_v44, %v1278_v43 }
  0x67   : > { %v692_v10 = vadd.f32 %v691_v33, %v690_v27  ;;  %v688_v39 = vmul.f32 %v687_v2, %v499_v31  ;;  %v682_v16 = vadd.f32 %v681_v29, %v680_v13  ;;  %v669_v17 = vadd.f32 %v668_v32, %v1314_v8 }
  0x68   : > { %v661_v38 = vadd.f32 %v660_v48, %v647_v15  ;;  %v720_v60 = vmul.f32 %v835_v7, %v1221_v4  ;;  %v705_v40 = vsel %vm704_vm10, %v703_v6, %v655_v36  ;;  %vm706_vm11 = vcmask 1044480  }
  0x69   : > { %v693_v30 = vrot.slane %v692_v10, 2  ;;  %v417_v42 = vadd.f32 %v416_v12, %v405_v37  ;;  %v683_v46 = vadd.f32 %v682_v16, %v1314_v8  ;;  %v707_v44 = vsel %vm706_vm11, %v705_v40, %v669_v17 }
  0x6a   : > { %v675_v52 = vadd.f32 %v674_v35, %v661_v38  ;;  %vm708_vm12 = vcmask 1045504   ;;  %vm710_vm13 = vcmask 1046528  }
  0x6b   : > { %v694_v41 = vadd.f32 %v693_v30, %v692_v10  ;;  %v709_v4 = vsel %vm708_vm12, %v707_v44, %v683_v46 }
  0x6c   : > { %v689_v45 = vadd.f32 %v688_v39, %v675_v52 }
  0x6d   : > { %v695_v43 = vrot.slane %v694_v41, 1 }
  0x6e   : > { %v721_v49 = vadd.f32 %v720_v60, %v689_v45 }
  0x6f   : > { %v696_v50 = vadd.f32 %v695_v43, %v694_v41 }
  0x70   : > { %v722_v53 = vmul.f32 %v721_v49, %v417_v42 }
  0x71   : > { %v697_v51 = vadd.f32 %v696_v50, %v1314_v8 }
  0x72   : > { %723 = vst [vmem:[%s1149_s25] sm:$0xff] %v722_v53 }
  0x73   : > { %v711_v55 = vsel %vm710_vm13, %v709_v4, %v697_v51 }
  0x74   : > { %929 = shalt.err (!%p926_p10)
}
  0x75   : > { %s930_s18 = scalar_lea.hbm %s1374_s15, 128  ;;  %s934_s17 = scalar_lea.hbm %s1438_s8, 512 }
  0x76   : > { %p931_p11 = scmp.ne.s32.totalorder %s1374_s15, %s930_s18  ;;  %p935_p0 = scmp.lt.u32.totalorder %s1374_s15, %s1438_s8 }
  0x77   : > { %p936_p1 = scmp.lt.u32.totalorder %s934_s17, %s930_s18  ;;  %p938_p3 = scmp.lt.u32.totalorder %s930_s18, %s1374_s15 }
  0x78   : > { %p932_p12 = pnand %p931_p11, %p1119_p8 }
  0x79   : > { %p937_p2 = por %p936_p1, %p935_p0 }
  0x7a   : > { %p933_p13 = pneg %p932_p12 }
  0x7b   : > { %p939_p4 = por %p938_p3, %p937_p2 }
  0x7d   : > { %p940_p5 = pnand %p939_p4, %p933_p13 }
  0x7f   : > { %943 = shalt.err (!%p940_p5)
}
  0x80   : > { %844 = dma.vmem_to_hbm [thread:$0]  (%p1119_p8), %s1376_s21, 128, %s1374_s15, %s725_s16   ;;  %712 = vst [vmem:[#allocation3] sm:$0xff] %v711_v55 }
  0x81 PF: > { %p850_p6 = scmp.ge.s32.totalorder %s1010_s12, 2  ;;  %s752_s30 = sand.u32 1, %s982_s27  }
  0x82   : > { %s753_s23 = scalar_lea.sflag [#allocation6], %s752_s30 }
  0x83   : > { %p847_p7 = pnand %p850_p6, %p1123_p9 }
  0x85   : > { %977 = dma.done.wait (!%p847_p7), %s753_s23, 128  }
  0x86   : > { %979 = vsyncadd (!%p847_p7), %s753_s23, 4294967168  ;;  %s21_s12 = sadd.s32 1, %s1010_s12   ;;  %s1448_s19 = sld [smem:[#allocation8_spill]] }
  0x87   : > { %p18_p10 = scmp.ge.s32.totalorder %s21_s12, 6   ;;  %s1449_s21 = sld [smem:[#allocation9_spill]] }
  0x88   : > { %s1450_s27 = smov %s986_s28  ;;  %s1451_s28 = smov %s990_s29 }
  0x89   : > { %s1452_s29 = smov %s1131_s24  ;;  %s1453_s30 = smov %s1002_s10 }
  0x8a   : > { %s1454_s9 = smov %s1006_s11  ;;  %20 = sbr.rel (!%p18_p10) target bundleno = 7 (0x7), region = 138 }
  0x8c   : > { %s1455_s10 = smov %s1448_s19 }
  0x8d   : > { %s1456_s11 = smov %s1449_s21 }
  0x91   :  { %758 = vsyncpa [#allocation6], 1 }
  0x92   :  { %760 = vsyncpa [#allocation6 + $0x1], 1 }

</bundles_post_ra>
